<compile_context>
chip_gen: v7x
topology: tpu7x:2x2x1
jax: 0.10.0
libtpu: 0.0.40
codegen_flags: <defaults>
</compile_context>

<pallas_src>
import jax
import jax.numpy as jnp
from jax.experimental import pallas as pl
from jax.experimental.pallas import tpu as pltpu

IN_F = 784
HID_F = 50
OUT_F = 10
OUT_PAD = 128          # lane-dense padded output width (multiple of 128)
TILE_B_MAX = 2048      # bf16 x tile ~3.1 MiB; double-buffered fits v7x's 64 MiB VMEM


def _mlp_kernel(x_ref, w1_ref, b1_ref, w2_ref, b2_ref, o_ref):
    # x:(TB,784) bf16   w1:(784,50) bf16   b1:(1,50)  f32
    # w2:(50,128) bf16  b2:(1,128) f32     o:(TB,128) f32
    h = jnp.dot(x_ref[...], w1_ref[...], preferred_element_type=jnp.float32)
    h = jnp.maximum(h + b1_ref[...], 0.0)                 # bias + ReLU in f32
    y = jnp.dot(h.astype(jnp.bfloat16), w2_ref[...],
                preferred_element_type=jnp.float32)
    o_ref[...] = (y + b2_ref[...]).astype(o_ref.dtype)


def small_linear_net_forward(x, w1, b1, w2, b2):
    """x: (B, 784) f32 -> (B, 10) f32.  w1:(784,50) b1:(50,) w2:(50,10) b2:(10,)."""
    B = x.shape[0]
    b1 = jnp.asarray(b1, jnp.float32).reshape(1, HID_F)
    b2 = jnp.asarray(b2, jnp.float32).reshape(1, OUT_F)

    # Lane-dense output: zero-pad the second layer to 128 output lanes.
    w2p = jnp.zeros((HID_F, OUT_PAD), jnp.float32).at[:, :OUT_F].set(w2)
    b2p = jnp.zeros((1, OUT_PAD), jnp.float32).at[:, :OUT_F].set(b2)

    # bf16 matmul operands; accumulation stays f32 inside the kernel.
    x_bf = x.astype(jnp.bfloat16)
    w1_bf = w1.astype(jnp.bfloat16)
    w2_bf = w2p.astype(jnp.bfloat16)

    # Batch tiling: single full block for small B; otherwise tile + pad batch.
    if B <= TILE_B_MAX:
        tile_b, b_padded = B, B
    else:
        tile_b = TILE_B_MAX
        b_padded = pl.cdiv(B, tile_b) * tile_b
        if b_padded != B:
            x_bf = jnp.pad(x_bf, ((0, b_padded - B), (0, 0)))
    grid = (b_padded // tile_b,)

    flops = 2 * b_padded * (IN_F * HID_F + HID_F * OUT_PAD)
    bytes_accessed = (x_bf.size * 2 + w1_bf.size * 2 + w2_bf.size * 2
                      + b1.size * 4 + b2p.size * 4 + b_padded * OUT_PAD * 4)

    out_padded = pl.pallas_call(
        _mlp_kernel,
        out_shape=jax.ShapeDtypeStruct((b_padded, OUT_PAD), jnp.float32),
        grid=grid,
        in_specs=[
            pl.BlockSpec((tile_b, IN_F), lambda i: (i, 0)),     # x tile per step
            pl.BlockSpec((IN_F, HID_F), lambda i: (0, 0)),      # weights resident
            pl.BlockSpec((1, HID_F), lambda i: (0, 0)),
            pl.BlockSpec((HID_F, OUT_PAD), lambda i: (0, 0)),
            pl.BlockSpec((1, OUT_PAD), lambda i: (0, 0)),
        ],
        out_specs=pl.BlockSpec((tile_b, OUT_PAD), lambda i: (i, 0)),
        compiler_params=pltpu.CompilerParams(
            dimension_semantics=("parallel",),   # v7x: shard batch over 2 TCs
            vmem_limit_bytes=64 << 20,
        ),
        cost_estimate=pl.CostEstimate(
            flops=flops, transcendentals=0, bytes_accessed=bytes_accessed),
    )(x_bf, w1_bf, b1, w2_bf, b2p)

    return out_padded[:B, :OUT_F]


def init_params(key):
    """Deterministic init mimicking nn.Linear default: U(-1/sqrt(fan_in), +)."""
    k1, k2, k3, k4 = jax.random.split(key, 4)
    bound1 = 1.0 / jnp.sqrt(784.0)
    bound2 = 1.0 / jnp.sqrt(50.0)
    w1 = jax.random.uniform(k1, (IN_F, HID_F), jnp.float32, -bound1, bound1)
    b1 = jax.random.uniform(k2, (HID_F,), jnp.float32, -bound1, bound1)
    w2 = jax.random.uniform(k3, (HID_F, OUT_F), jnp.float32, -bound2, bound2)
    b2 = jax.random.uniform(k4, (OUT_F,), jnp.float32, -bound2, bound2)
    return w1, b1, w2, b2


def _ref(x, w1, b1, w2, b2):
    return jnp.maximum(x @ w1 + b1[None, :], 0.0) @ w2 + b2[None, :]


if __name__ == "__main__":
    key = jax.random.PRNGKey(0)
    kx, kp, kx2 = jax.random.split(key, 3)
    w1, b1, w2, b2 = init_params(kp)

    # Small batch: single-block path.
    B = 8
    x = jax.random.normal(kx, (B, IN_F), jnp.float32)
    out = jax.block_until_ready(small_linear_net_forward(x, w1, b1, w2, b2))
    ref = _ref(x, w1, b1, w2, b2)
    assert out.shape == (B, OUT_F)
    # bf16 operands -> loosened tolerance (f32 accumulation keeps it tight-ish).
    assert jnp.allclose(out, ref, atol=3e-2, rtol=3e-2)

    # Larger batch: exercises the tiled + padded grid path (2 grid steps).
    B2 = 2500
    x2 = jax.random.normal(kx2, (B2, IN_F), jnp.float32)
    out2 = jax.block_until_ready(small_linear_net_forward(x2, w1, b1, w2, b2))
    ref2 = _ref(x2, w1, b1, w2, b2)
    assert out2.shape == (B2, OUT_F)
    assert jnp.allclose(out2, ref2, atol=3e-2, rtol=3e-2)

    print("KERNEL_OK")
</pallas_src>

<mosaic_0001>
module attributes {stable_mosaic.version = 11 : i64} {
  func.func @_mlp_kernel(%arg0: i32, %arg1: memref<8x784xbf16, #tpu.memory_space<vmem>>, %arg2: memref<784x50xbf16, #tpu.memory_space<vmem>>, %arg3: memref<1x50xf32, #tpu.memory_space<vmem>>, %arg4: memref<50x128xbf16, #tpu.memory_space<vmem>>, %arg5: memref<1x128xf32, #tpu.memory_space<vmem>>, %arg6: memref<8x128xf32, #tpu.memory_space<vmem>>) attributes {dimension_semantics = [#tpu.dimension_semantics<parallel>], iteration_bounds = array<i64: 1>, scalar_prefetch = 0 : i64, scratch_operands = 0 : i64, tpu.core_type = #tpu.core_type<tc>, window_params = [{transform_indices = @transform_0, window_bounds = array<i64: 8, 784>}, {pipeline_mode = #tpu.pipeline_mode<synchronous>, transform_indices = @transform_1, window_bounds = array<i64: 784, 50>}, {pipeline_mode = #tpu.pipeline_mode<synchronous>, transform_indices = @transform_2, window_bounds = array<i64: 1, 50>}, {pipeline_mode = #tpu.pipeline_mode<synchronous>, transform_indices = @transform_3, window_bounds = array<i64: 50, 128>}, {pipeline_mode = #tpu.pipeline_mode<synchronous>, transform_indices = @transform_4, window_bounds = array<i64: 1, 128>}, {transform_indices = @transform_5, window_bounds = array<i64: 8, 128>}]} {
    %c0 = arith.constant 0 : index
    %c0_0 = arith.constant 0 : index
    %0 = vector.load %arg1[%c0, %c0_0] : memref<8x784xbf16, #tpu.memory_space<vmem>>, vector<8x784xbf16>
    %c0_1 = arith.constant 0 : index
    %c0_2 = arith.constant 0 : index
    %1 = vector.load %arg2[%c0_1, %c0_2] : memref<784x50xbf16, #tpu.memory_space<vmem>>, vector<784x50xbf16>
    %cst = arith.constant dense<0.000000e+00> : vector<8x50xf32>
    %2 = tpu.matmul %0, %1, %cst {dimension_numbers = #tpu.dot_dimension_numbers<[1], [0], [0], [1], [0, 0, 1, 1], [], []>} : vector<8x784xbf16>, vector<784x50xbf16>, vector<8x50xf32> -> vector<8x50xf32>
    %c0_3 = arith.constant 0 : index
    %c0_4 = arith.constant 0 : index
    %3 = vector.load %arg3[%c0_3, %c0_4] : memref<1x50xf32, #tpu.memory_space<vmem>>, vector<1x50xf32>
    %4 = vector.broadcast %3 : vector<1x50xf32> to vector<8x50xf32>
    %5 = arith.addf %2, %4 : vector<8x50xf32>
    %cst_5 = arith.constant 0.000000e+00 : f32
    %6 = vector.broadcast %cst_5 : f32 to vector<8x50xf32>
    %7 = arith.maximumf %5, %6 : vector<8x50xf32>
    %8 = arith.truncf %7 : vector<8x50xf32> to vector<8x50xbf16>
    %c0_6 = arith.constant 0 : index
    %c0_7 = arith.constant 0 : index
    %9 = vector.load %arg4[%c0_6, %c0_7] : memref<50x128xbf16, #tpu.memory_space<vmem>>, vector<50x128xbf16>
    %cst_8 = arith.constant dense<0.000000e+00> : vector<8x128xf32>
    %10 = tpu.matmul %8, %9, %cst_8 {dimension_numbers = #tpu.dot_dimension_numbers<[1], [0], [0], [1], [0, 0, 1, 1], [], []>} : vector<8x50xbf16>, vector<50x128xbf16>, vector<8x128xf32> -> vector<8x128xf32>
    %c0_9 = arith.constant 0 : index
    %c0_10 = arith.constant 0 : index
    %11 = vector.load %arg5[%c0_9, %c0_10] : memref<1x128xf32, #tpu.memory_space<vmem>>, vector<1x128xf32>
    %12 = vector.broadcast %11 : vector<1x128xf32> to vector<8x128xf32>
    %13 = arith.addf %10, %12 : vector<8x128xf32>
    %c0_11 = arith.constant 0 : index
    %c0_12 = arith.constant 0 : index
    %14 = vector.load %arg6[%c0_11, %c0_12] : memref<8x128xf32, #tpu.memory_space<vmem>>, vector<8x128xf32>
    tpu.vector_store %arg6[%c0_11, %c0_12], %13 {strides = array<i32>} : memref<8x128xf32, #tpu.memory_space<vmem>>, vector<8x128xf32>,
    return
  }
  func.func @transform_0(%arg0: i32) -> (i32, i32) {
    %c0_i32 = arith.constant 0 : i32
    %c0_i32_0 = arith.constant 0 : i32
    return %arg0, %c0_i32 : i32, i32
  }
  func.func @transform_1(%arg0: i32) -> (i32, i32) {
    %c0_i32 = arith.constant 0 : i32
    %c0_i32_0 = arith.constant 0 : i32
    %c0_i32_1 = arith.constant 0 : i32
    return %c0_i32, %c0_i32_0 : i32, i32
  }
  func.func @transform_2(%arg0: i32) -> (i32, i32) {
    %c0_i32 = arith.constant 0 : i32
    %c0_i32_0 = arith.constant 0 : i32
    %c0_i32_1 = arith.constant 0 : i32
    return %c0_i32, %c0_i32_0 : i32, i32
  }
  func.func @transform_3(%arg0: i32) -> (i32, i32) {
    %c0_i32 = arith.constant 0 : i32
    %c0_i32_0 = arith.constant 0 : i32
    %c0_i32_1 = arith.constant 0 : i32
    return %c0_i32, %c0_i32_0 : i32, i32
  }
  func.func @transform_4(%arg0: i32) -> (i32, i32) {
    %c0_i32 = arith.constant 0 : i32
    %c0_i32_0 = arith.constant 0 : i32
    %c0_i32_1 = arith.constant 0 : i32
    return %c0_i32, %c0_i32_0 : i32, i32
  }
  func.func @transform_5(%arg0: i32) -> (i32, i32) {
    %c0_i32 = arith.constant 0 : i32
    %c0_i32_0 = arith.constant 0 : i32
    return %arg0, %c0_i32 : i32, i32
  }
}

</mosaic_0001>

<bundles_post_ra>
// kernel: tpu_custom_call.1
= control target key start
LH: loop header
LB: loop body
LE: loop exit
PB: predicated region body
PF: predicated region fallthrough
CT: control target
= control target key end

     0   :  { %10 = vsyncpa [#allocation3], 0  ;;  %s1257_s0 = inlined_call_operand.hbm [shape: bf16[8,784], index: 0, kind: input, shape index: {}]   ;;  %s1258_s1 = inlined_call_operand.hbm [shape: bf16[784,50], index: 1, kind: input, shape index: {}]   ;;  %s1259_s2 = inlined_call_operand.hbm [shape: f32[1,50], index: 2, kind: input, shape index: {}]   ;;  %s1260_s3 = inlined_call_operand.hbm [shape: bf16[50,128], index: 3, kind: input, shape index: {}]   ;;  %s1261_s4 = inlined_call_operand.hbm [shape: f32[1,128], index: 4, kind: input, shape index: {}]   ;;  %s1262_s5 = inlined_call_operand.hbm [shape: f32[8,128], index: 5, kind: output, shape index: {}]  }
   0x1   :  { %11 = vsyncpa [#allocation6], 0 }
   0x2   :  { %12 = vsyncpa [#allocation9], 0 }
   0x3   :  { %13 = vsyncpa [#allocation4], 0  ;;  %s1143_s18 = smov [#allocation5]   ;;  %s1003_s22 = scalar_lea.hbm %s1258_s1, 6272 }
   0x4   :  { %s29_s19 = sshll.u32 %s1143_s18, 4  ;;  %p1004_p0 = scmp.ne.s32.totalorder %s1258_s1, %s1003_s22  ;;  %s30_s19 = int_to_ptr.vmem [resolvable:$true] %s29_s19 }
   0x5   :  { %p1007_p1 = scmp.lt.u32.totalorder %s1003_s22, %s1258_s1 }
   0x7   :  { %p1009_p2 = pnand %p1007_p1, %p1004_p0 }
   0x9   :  { %1012 = shalt.err (!%p1009_p2)
}
   0xa   :  { %s1013_s27 = scalar_lea.vmem %s30_s19, 6272  ;;  %p1018_p4 = scmp.lt.s32.totalorder %s30_s19, %s30_s19 }
   0xb   :  { %p1014_p3 = scmp.ne.s32.totalorder %s30_s19, %s1013_s27  ;;  %p1019_p5 = scmp.lt.s32.totalorder %s1013_s27, %s1013_s27 }
   0xd   :  { %p1020_p6 = por %p1019_p5, %p1018_p4 }
   0xf   :  { %p1021_p7 = pnand %p1020_p6, %p1014_p3 }
  0x11   :  { %1024 = shalt.err (!%p1021_p7)
}
  0x12   :  { %s1144_s28 = smov 64   ;;  %s1145_s29 = smov 4  }
  0x13   :  { %35 = dma.hbm_to_vmem [thread:$0]  %s1258_s1, 6272, %s30_s19, [#allocation6], %s1144_s28, %s1144_s28, %s1145_s29  }
  0x14   :  { %s1146_s7 = smov [#allocation8]   ;;  %s1147_s9 = smov [#allocation2]  }
  0x15   :  { %s51_s8 = sshll.u32 %s1146_s7, 4  ;;  %s20_s10 = sshll.u32 %s1147_s9, 4  ;;  %s52_s8 = int_to_ptr.vmem [resolvable:$true] %s51_s8  ;;  %s21_s10 = int_to_ptr.vmem [resolvable:$true] %s20_s10 }
  0x16   :  { %s1025_s13 = scalar_lea.hbm %s1260_s3, 448 }
  0x17   :  { %p1026_p8 = scmp.ne.s32.totalorder %s1260_s3, %s1025_s13  ;;  %p1029_p9 = scmp.lt.u32.totalorder %s1025_s13, %s1260_s3 }
  0x19   :  { %p1031_p10 = pnand %p1029_p9, %p1026_p8 }
  0x1b   :  { %1034 = shalt.err (!%p1031_p10)
}
  0x1c   :  { %s1035_s1 = scalar_lea.vmem %s52_s8, 448  ;;  %p1040_p12 = scmp.lt.s32.totalorder %s52_s8, %s52_s8 }
  0x1d   :  { %p1036_p11 = scmp.ne.s32.totalorder %s52_s8, %s1035_s1  ;;  %p1041_p13 = scmp.lt.s32.totalorder %s1035_s1, %s1035_s1 }
  0x1f   :  { %p1042_p0 = por %p1041_p13, %p1040_p12 }
  0x21   :  { %p1043_p1 = pnand %p1042_p0, %p1036_p11 }
  0x23   :  { %1046 = shalt.err (!%p1043_p1)
}
  0x24   :  { %57 = dma.hbm_to_vmem [thread:$0]  %s1260_s3, 448, %s52_s8, [#allocation9], %s1144_s28, %s1144_s28, %s1145_s29  }
  0x25   :  { %s1047_s22 = scalar_lea.hbm %s1257_s0, 448 }
  0x26   :  { %p1048_p2 = scmp.ne.s32.totalorder %s1257_s0, %s1047_s22  ;;  %p1051_p3 = scmp.lt.u32.totalorder %s1047_s22, %s1257_s0 }
  0x28   :  { %p1053_p4 = pnand %p1051_p3, %p1048_p2 }
  0x2a   :  { %1056 = shalt.err (!%p1053_p4)
}
  0x2b   :  { %s1057_s27 = scalar_lea.vmem %s21_s10, 448  ;;  %p1062_p6 = scmp.lt.s32.totalorder %s21_s10, %s21_s10 }
  0x2c   :  { %p1058_p5 = scmp.ne.s32.totalorder %s21_s10, %s1057_s27  ;;  %p1063_p7 = scmp.lt.s32.totalorder %s1057_s27, %s1057_s27 }
  0x2e   :  { %p1064_p8 = por %p1063_p7, %p1062_p6 }
  0x30   :  { %p1065_p9 = pnand %p1064_p8, %p1058_p5 }
  0x32   :  { %1068 = shalt.err (!%p1065_p9)
}
  0x33   :  { %23 = dma.hbm_to_vmem [thread:$0]  %s1257_s0, 448, %s21_s10, [#allocation3]  }
  0x34   :  { %s1148_s29 = smov [#allocation7]   ;;  %s1149_s6 = smov [#allocation10]  }
  0x35   :  { %s42_s30 = sshll.u32 %s1148_s29, 4  ;;  %s64_s7 = sshll.u32 %s1149_s6, 4  ;;  %s43_s30 = int_to_ptr.vmem [resolvable:$true] %s42_s30  ;;  %s65_s7 = int_to_ptr.vmem [resolvable:$true] %s64_s7 }
  0x36   :  { %s1069_s11 = scalar_lea.hbm %s1259_s2, 16 }
  0x37   :  { %p1070_p10 = scmp.ne.s32.totalorder %s1259_s2, %s1069_s11  ;;  %p1073_p11 = scmp.lt.u32.totalorder %s1069_s11, %s1259_s2 }
  0x39   :  { %p1075_p12 = pnand %p1073_p11, %p1070_p10 }
  0x3b   :  { %1078 = shalt.err (!%p1075_p12)
}
  0x3c   :  { %s1079_s0 = scalar_lea.vmem %s43_s30, 16  ;;  %s1083_s10 = scalar_lea.vmem %s43_s30, 32 }
  0x3d   :  { %p1080_p13 = scmp.ne.s32.totalorder %s43_s30, %s1079_s0  ;;  %p1084_p0 = scmp.lt.s32.totalorder %s43_s30, %s43_s30 }
  0x3e   :  { %p1085_p1 = scmp.lt.s32.totalorder %s1083_s10, %s1079_s0 }
  0x40   :  { %p1086_p2 = por %p1085_p1, %p1084_p0 }
  0x42   :  { %p1087_p3 = pnand %p1086_p2, %p1080_p13 }
  0x44   :  { %1090 = shalt.err (!%p1087_p3)
}
  0x45   :  { %45 = dma.hbm_to_vmem [thread:$0]  %s1259_s2, 16, %s43_s30, [#allocation6]  }
  0x46   :  { %s1091_s19 = scalar_lea.hbm %s1261_s4, 16 }
  0x47   :  { %p1092_p4 = scmp.ne.s32.totalorder %s1261_s4, %s1091_s19  ;;  %p1095_p5 = scmp.lt.u32.totalorder %s1091_s19, %s1261_s4 }
  0x49   :  { %p1097_p6 = pnand %p1095_p5, %p1092_p4 }
  0x4b   :  { %1100 = shalt.err (!%p1097_p6)
}
  0x4c   :  { %s1101_s24 = scalar_lea.vmem %s65_s7, 16  ;;  %s1105_s25 = scalar_lea.vmem %s65_s7, 32 }
  0x4d   :  { %p1102_p7 = scmp.ne.s32.totalorder %s65_s7, %s1101_s24  ;;  %p1106_p8 = scmp.lt.s32.totalorder %s65_s7, %s65_s7 }
  0x4e   :  { %p1107_p9 = scmp.lt.s32.totalorder %s1105_s25, %s1101_s24 }
  0x50   :  { %p1108_p10 = por %p1107_p9, %p1106_p8 }
  0x52   :  { %p1109_p11 = pnand %p1108_p10, %p1102_p7 }
  0x54   :  { %1112 = shalt.err (!%p1109_p11)
}
  0x55   :  { %67 = dma.hbm_to_vmem [thread:$0]  %s1261_s4, 16, %s65_s7, [#allocation9]  }
  0x56   :  { %1135 = dma.done.wait [#allocation3], 448  }
  0x57   :  { %1136 = vsyncadd [#allocation3], 4294966848 }
  0x58   :  { %1137 = dma.done.wait [#allocation6], 6288  }
  0x59   :  { %1138 = vsyncadd [#allocation6], 4294961008 }
  0x5a   :  { %1139 = dma.done.wait [#allocation9], 464  }
  0x5b   :  { %1140 = vsyncadd [#allocation9], 4294966832  ;;  %v943_v0 = vld [vmem:[#allocation5 + $0x40] sm:$0xff]   ;;  %v947_v4 = vld [vmem:[#allocation5 + $0x48] sm:$0xff]   ;;  %v1150_v43 = vmov 0.0   ;;  %vm1151_vm0 = vmmov 0  }
  0x5c   :  { %v944_v1 = vld [vmem:[#allocation5] sm:$0xff]   ;;  %842 = vmatprep.subr.bf16.mxu0 %v943_v0  ;;  %v948_v5 = vld [vmem:[#allocation5 + $0x8] sm:$0xff]   ;;  %v951_v8 = vld [vmem:[#allocation5 + $0x50] sm:$0xff]   ;;  %vm511_vm1 = vcmask 130048   ;;  %vm716_vm2 = vcmask 1040384   ;;  %vm712_vm3 = vcmask 408576  }
  0x5d   :  { %v945_v2 = vld [vmem:[#allocation5 + $0xc0] sm:$0xff]   ;;  %843 = vmatpush3.bf16.msra.mxu0 %v944_v1  ;;  %v949_v6 = vld [vmem:[#allocation5 + $0xc8] sm:$0xff]   ;;  %v952_v9 = vld [vmem:[#allocation5 + $0x10] sm:$0xff]   ;;  %s1152_s4 = smov [#allocation11]  }
  0x5e   :  { %v946_v3 = vld [vmem:[#allocation5 + $0x80] sm:$0xff]   ;;  %864 = vmatprep.subr.bf16.mxu1 %v945_v2  ;;  %844 = vmatprep.subr.bf16.mxu0 %v947_v4  ;;  %v950_v7 = vld [vmem:[#allocation5 + $0x88] sm:$0xff]   ;;  %v953_v10 = vld [vmem:[#allocation5 + $0xd0] sm:$0xff]   ;;  %s767_s27 = sshll.u32 %s1152_s4, 4  ;;  %s768_s27 = int_to_ptr.vmem [resolvable:$true] %s767_s27 }
  0x5f   :  { %865 = vmatpush3.bf16.msra.mxu1 %v946_v3  ;;  %v954_v11 = vld [vmem:[#allocation5 + $0x90] sm:$0xff]   ;;  %v955_v12 = vld [vmem:[#allocation5 + $0x58] sm:$0xff]   ;;  %v959_v16 = vld [vmem:[#allocation5 + $0x60] sm:$0xff]   ;;  %s1113_s3 = scalar_lea.vmem %s768_s27, 128  ;;  %p1118_p13 = scmp.lt.s32.totalorder %s768_s27, %s768_s27 }
  0x60   :  { %866 = vmatprep.subr.bf16.mxu1 %v949_v6  ;;  %v956_v13 = vld [vmem:[#allocation5 + $0x18] sm:$0xff]   ;;  %v960_v17 = vld [vmem:[#allocation5 + $0x20] sm:$0xff]   ;;  %v963_v20 = vld [vmem:[#allocation5 + $0x68] sm:$0xff]   ;;  %p1114_p12 = scmp.ne.s32.totalorder %s768_s27, %s1113_s3  ;;  %p1119_p0 = scmp.lt.s32.totalorder %s1113_s3, %s1113_s3 }
  0x61   :  { %845 = vmatpush3.bf16.msra.mxu0 %v948_v5  ;;  %v957_v14 = vld [vmem:[#allocation5 + $0xd8] sm:$0xff]   ;;  %v961_v18 = vld [vmem:[#allocation5 + $0xe0] sm:$0xff]   ;;  %v964_v21 = vld [vmem:[#allocation5 + $0x28] sm:$0xff]  }
  0x62   :  { %846 = vmatprep.subr.bf16.mxu0 %v951_v8  ;;  %v958_v15 = vld [vmem:[#allocation5 + $0x98] sm:$0xff]   ;;  %v962_v19 = vld [vmem:[#allocation5 + $0xa0] sm:$0xff]   ;;  %v965_v22 = vld [vmem:[#allocation5 + $0xe8] sm:$0xff]   ;;  %p1120_p1 = por %p1119_p0, %p1118_p13 }
  0x63   :  { %867 = vmatpush3.bf16.msra.mxu1 %v950_v7  ;;  %v966_v23 = vld [vmem:[#allocation5 + $0xa8] sm:$0xff]   ;;  %v967_v24 = vld [vmem:[#allocation5 + $0x70] sm:$0xff]   ;;  %v971_v28 = vld [vmem:[#allocation5 + $0x78] sm:$0xff]  }
  0x64   :  { %868 = vmatprep.subr.bf16.mxu1 %v953_v10  ;;  %v968_v25 = vld [vmem:[#allocation5 + $0x30] sm:$0xff]   ;;  %v972_v29 = vld [vmem:[#allocation5 + $0x38] sm:$0xff]   ;;  %v84_v31 = vld [vmem:[#allocation2] sm:$0xff]  ;;  %p1121_p2 = pnand %p1120_p1, %p1114_p12 }
  0x65   :  { %847 = vmatpush3.bf16.msra.mxu0 %v952_v9  ;;  %v969_v26 = vld [vmem:[#allocation5 + $0xf0] sm:$0xff]   ;;  %v973_v30 = vld [vmem:[#allocation5 + $0xf8] sm:$0xff]   ;;  %v779_v32 = vcombine.low %v84_v31, %v84_v31  ;;  %v780_v33 = vcombine.high %v84_v31, %v84_v31  ;;  %v977_v35 = vld [vmem:[#allocation5 + $0x140] sm:$0xff]  }
  0x66   :  { %848 = vmatprep.subr.bf16.mxu0 %v955_v12  ;;  %v970_v27 = vld [vmem:[#allocation5 + $0xb0] sm:$0xff]   ;;  %v976_v34 = vld [vmem:[#allocation5 + $0xb8] sm:$0xff]   ;;  %v980_v39 = vld [vmem:[#allocation5 + $0x100] sm:$0xff]  }
  0x67   :  { %869 = vmatpush3.bf16.msra.mxu1 %v954_v11  ;;  %v85_v36 = vld [vmem:[#allocation2 + $0x8] sm:$0xff]  ;;  %547 = vmatprep.mubr.bf16.mxu0 %v780_v33  ;;  %v985_v45 = vld [vmem:[#allocation5 + $0x158] sm:$0xff]   ;;  %v987_v47 = vld [vmem:[#allocation5 + $0x160] sm:$0xff]  }
  0x68   :  { %870 = vmatprep.subr.bf16.mxu1 %v957_v14  ;;  %v781_v37 = vcombine.low %v85_v36, %v85_v36  ;;  %v782_v38 = vcombine.high %v85_v36, %v85_v36  ;;  %v981_v40 = vld [vmem:[#allocation5 + $0x148] sm:$0xff]   ;;  %v983_v42 = vld [vmem:[#allocation5 + $0x150] sm:$0xff]   ;;  %v986_v46 = vld [vmem:[#allocation5 + $0x118] sm:$0xff]  }
  0x69   :  { %849 = vmatpush3.bf16.msra.mxu0 %v956_v13  ;;  %v982_v41 = vld [vmem:[#allocation5 + $0x108] sm:$0xff]   ;;  %v984_v44 = vld [vmem:[#allocation5 + $0x110] sm:$0xff]   ;;  %v988_v48 = vld [vmem:[#allocation5 + $0x120] sm:$0xff]  }
  0x6a   :  { %850 = vmatprep.subr.bf16.mxu0 %v959_v16  ;;  %587 = vmatprep.mubr.bf16.mxu1 %v782_v38  ;;  %v989_v49 = vld [vmem:[#allocation5 + $0x168] sm:$0xff]   ;;  %v995_v50 = vld [vmem:[#allocation5 + $0x180] sm:$0xff]   ;;  %v86_v51 = vld [vmem:[#allocation2 + $0x10] sm:$0xff] }
  0x6b   :  { %871 = vmatpush3.bf16.msra.mxu1 %v958_v15  ;;  %v990_v52 = vld [vmem:[#allocation5 + $0x128] sm:$0xff]   ;;  %v784_v53 = vcombine.high %v86_v51, %v86_v51  ;;  %v998_v54 = vld [vmem:[#allocation2 + $0x18] ss:$0 sps:$4 sm:$0xff]   ;;  %v991_v55 = vld [vmem:[#allocation5 + $0x170] sm:$0xff]   ;;  %v783_v59 = vcombine.low %v86_v51, %v86_v51 }
  0x6c   :  { %872 = vmatprep.subr.bf16.mxu1 %v961_v18  ;;  %v992_v56 = vld [vmem:[#allocation5 + $0x130] sm:$0xff]   ;;  %v993_v57 = vld [vmem:[#allocation5 + $0x178] sm:$0xff]   ;;  %v1002_v63 = vld [vmem:[#allocation8 + $0x18] ss:$0 sps:$4 sm:$0x11]  }
  0x6d   :  { %851 = vmatpush3.bf16.msra.mxu0 %v960_v17  ;;  %v994_v58 = vld [vmem:[#allocation5 + $0x138] sm:$0xff]   ;;  %v999_v60 = vld [vmem:[#allocation8] sm:$0xff]   ;;  %v718_v0 = vsel %vm716_vm2, %v1002_v63, 0  ;;  %v778_v2 = vld [vmem:[#allocation7] ss:$0 sm:$0xff] }
  0x6e   :  { %852 = vmatprep.subr.bf16.mxu0 %v963_v20  ;;  %v1000_v61 = vld [vmem:[#allocation8 + $0x8] sm:$0xff]   ;;  %v1001_v62 = vld [vmem:[#allocation8 + $0x10] sm:$0xff]  }
  0x6f   :  { %873 = vmatpush3.bf16.msra.mxu1 %v962_v19 }
  0x70   :  { %874 = vmatprep.subr.bf16.mxu1 %v965_v22 }
  0x71   :  { %853 = vmatpush3.bf16.msra.mxu0 %v964_v21 }
  0x72   :  { %854 = vmatprep.subr.bf16.mxu0 %v967_v24 }
  0x73   :  { %875 = vmatpush3.bf16.msra.mxu1 %v966_v23 }
  0x74   :  { %876 = vmatprep.subr.bf16.mxu1 %v969_v26 }
  0x75   :  { %855 = vmatpush3.bf16.msra.mxu0 %v968_v25 }
  0x76   :  { %856 = vmatprep.subr.bf16.mxu0 %v971_v28 }
  0x77   :  { %877 = vmatpush3.bf16.msra.mxu1 %v970_v27  ;;  %v836_v27 = vld [vmem:[#allocation10] ss:$0 sm:$0xff] }
  0x78   :  { %878 = vmatprep.subr.bf16.mxu1 %v973_v30 }
  0x79   :  { %857 = vmatpush3.bf16.msra.mxu0 %v972_v29 }
  0x7a   :  { %886 = vmatprep.subr.bf16.mxu0 %v977_v35 }
  0x7b   :  { %879 = vmatpush3.bf16.msra.mxu1 %v976_v34 }
  0x7c   :  { %548 = vmatmul.mubr.bf16.vlgmr.msra.gmra.mrb[0].mxu0 %v779_v32  ;;  %915 = vmatprep.subr.bf16.mxu1 %v1150_v43 }
  0x7d   :  { %887 = vmatpush3.bf16.msra.mxu0 %v980_v39  ;;  %627 = vmatprep.mubr.bf16.mxu0 %v784_v53 }
  0x7e   :  { %588 = vmatmul.mubr.bf16.vlgmr.msra.gmra.mrb[0].mxu1 %v781_v37  ;;  %888 = vmatprep.subr.bf16.mxu0 %v981_v40 }
  0x7f   :  { %917 = vmatprep.mubr.msk.bf16.mxu1 %vm1151_vm0, %v1150_v43  ;;  %916 = vmatpush3.bf16.msra.mxu1 %v995_v50 }
  0x80   :  { %921 = vmatprep.subr.bf16.mxu1 %v1150_v43 }
  0x81   :  { %889 = vmatpush3.bf16.msra.mxu0 %v982_v41 }
  0x82   :  { %890 = vmatprep.subr.bf16.mxu0 %v983_v42 }
  0x85   :  { %891 = vmatpush3.bf16.msra.mxu0 %v984_v44 }
  0x86   :  { %892 = vmatprep.subr.bf16.mxu0 %v985_v45  ;;  %918 = vmatmul.mubr.msk.bf16.vlgmr.msra.gmra.mrb[4].mxu1 %vm511_vm1, %v998_v54 }
  0x87   :  { %929 = vmatprep.mubr.msk.bf16.mxu1 %vm1151_vm0, %v1150_v43  ;;  %922 = vmatpush3.bf16.msra.mxu1 %v999_v60 }
  0x88   :  { %923 = vmatprep.subr.bf16.mxu1 %v1150_v43 }
  0x89   :  { %893 = vmatpush3.bf16.msra.mxu0 %v986_v46 }
  0x8a   :  { %894 = vmatprep.subr.bf16.mxu0 %v987_v47 }
  0x8b   :  { %924 = vmatpush3.bf16.msra.mxu1 %v1000_v61 }
  0x8c   :  { %925 = vmatprep.subr.bf16.mxu1 %v1150_v43 }
  0x8d   :  { %895 = vmatpush3.bf16.msra.mxu0 %v988_v48 }
  0x8e   :  { %896 = vmatprep.subr.bf16.mxu0 %v989_v49 }
  0x8f   :  { %926 = vmatpush3.bf16.msra.mxu1 %v1001_v62 }
  0x90   :  { %927 = vmatprep.subr.bf16.mxu1 %v1150_v43 }
  0x91   :  { %897 = vmatpush3.bf16.msra.mxu0 %v990_v52 }
  0x92   :  { %898 = vmatprep.subr.bf16.mxu0 %v991_v55 }
  0x93   :  { %928 = vmatpush3.bf16.msra.mxu1 %v718_v0 }
  0x95   :  { %899 = vmatpush3.bf16.msra.mxu0 %v992_v56 }
  0x96   :  { %900 = vmatprep.subr.bf16.mxu0 %v993_v57 }
  0x99   :  { %901 = vmatpush3.bf16.msra.mxu0 %v994_v58 }
  0x9c   :  { %628 = vmatmul.mubr.bf16.vlgmr.msra.gmra.mrb[4].mxu0 %v783_v59 }
 0x14f   :  { %v858_v1 = vpop.f32.mrb[0].mxu0 }
 0x150   :  { %v859_v3 = vpop.f32.mrb[1].mxu0 }
 0x151   :  { %v860_v4 = vadd.f32 %v859_v3, %v858_v1  ;;  %v861_v5 = vpop.f32.mrb[2].mxu0  ;;  %v880_v6 = vpop.f32.mrb[0].mxu1 }
 0x152   :  { %v862_v7 = vpop.f32.mrb[3].mxu0  ;;  %v881_v8 = vpop.f32.mrb[1].mxu1 }
 0x153   :  { %v550_v9 = vadd.f32 %v860_v4, %v778_v2  ;;  %v882_v10 = vadd.f32 %v881_v8, %v880_v6  ;;  %v883_v11 = vpop.f32.mrb[2].mxu1 }
 0x154   :  { %v884_v12 = vpop.f32.mrb[3].mxu1 }
 0x155   :  { %v590_v13 = vadd.f32 %v882_v10, %v550_v9 }
 0x159   :  { %v669_v14 = vpop.f32.mrb[4].mxu1 }
 0x15a   :  { %v919_v15 = vpop.f32.mrb[5].mxu1 }
 0x15b   :  { %v672_v16 = vpop.f32.mrb[6].mxu1 }
 0x15c   :  { %v920_v17 = vpop.f32.mrb[7].mxu1 }
 0x16f   :  { %v902_v18 = vpop.f32.mrb[4].mxu0 }
 0x170   :  { %v903_v19 = vpop.f32.mrb[5].mxu0 }
 0x171   :  { %v904_v20 = vadd.f32 %v903_v19, %v902_v18  ;;  %v905_v21 = vpop.f32.mrb[6].mxu0 }
 0x172   :  { %v906_v22 = vpop.f32.mrb[7].mxu0 }
 0x173   :  { %v630_v23 = vadd.f32 %v904_v20, %v590_v13 }
 0x175   :  { %v670_v24 = vadd.f32 %v669_v14, %v630_v23 }
 0x177   :  { %v675_v25 = vmax.f32 %v670_v24, 0.0 }
 0x179   :  { %v676_v26 = vpack.c.bf16 %v675_v25, %v675_v25 }
 0x17b   :  { %930 = vmatmul.mubr.msk.bf16.vlgmr.msra.gmra.mrb[8].mxu1 %vm712_vm3, %v676_v26 }
 0x24e   :  { %v754_v28 = vpop.f32.mrb[8].mxu1 }
 0x24f   :  { %v755_v29 = vadd.f32 %v836_v27, %v754_v28  ;;  %v931_v30 = vpop.f32.mrb[9].mxu1 }
 0x250   :  { %v757_v31 = vpop.f32.mrb[10].mxu1 }
 0x251   :  { %760 = vst [vmem:[#allocation11] sm:$0xff] %v755_v29  ;;  %v932_v32 = vpop.f32.mrb[11].mxu1 }
 0x252   :  { %1124 = shalt.err (!%p1121_p2)
}
 0x253   :  { %s1125_s30 = scalar_lea.hbm %s1262_s5, 128 }
 0x254   :  { %p1126_p3 = scmp.ne.s32.totalorder %s1262_s5, %s1125_s30  ;;  %p1129_p4 = scmp.lt.u32.totalorder %s1125_s30, %s1262_s5 }
 0x256   :  { %p1131_p5 = pnand %p1129_p4, %p1126_p3 }
 0x258   :  { %1134 = shalt.err (!%p1131_p5)
}
 0x259   :  { %770 = dma.vmem_to_hbm [thread:$0]  %s768_s27, 128, %s1262_s5, [#allocation4]  }
 0x25a   :  { %1141 = dma.done.wait [#allocation4], 128  }
 0x25b   :  { %1142 = vsyncadd [#allocation4], 4294967168 }
 0x25c   :  { %774 = vsyncpa [#allocation3], 1 }
 0x25d   :  { %775 = vsyncpa [#allocation6], 1 }
 0x25e   :  { %776 = vsyncpa [#allocation9], 1 }
 0x25f   :  { %777 = vsyncpa [#allocation4], 1 }

</bundles_post_ra>
